<compile_context>
chip_gen: v7x
topology: tpu7x:2x2x1
jax: 0.10.0
libtpu: 0.0.40
codegen_flags: <defaults>
</compile_context>

<pallas_src>
import jax
import jax.numpy as jnp
from jax.experimental import pallas as pl
from jax.experimental.pallas import tpu as pltpu


def _round_up(x, m):
    return (x + m - 1) // m * m


def _pick_tile(dim, base, align):
    """Whole (aligned) dim if it is small, otherwise the base tile size."""
    if dim <= base:
        return _round_up(dim, align)
    return base


# ----------------------------------------------------------------------------
# Kernels
# ----------------------------------------------------------------------------
def _perceptron_kernel_single_k(x_ref, w_ref, b_ref, o_ref):
    # Whole reduction in one tile.  Grid = (nj, ni): j (out tiles) is the
    # outer axis, i (batch tiles) the inner axis, so the (K, tn) W slab's
    # block index is constant across the inner loop and stays VMEM-resident.
    z = jnp.dot(x_ref[...], w_ref[...], preferred_element_type=jnp.float32)
    o_ref[...] = jax.nn.sigmoid(z + b_ref[...]).astype(o_ref.dtype)


def _perceptron_kernel_tiled_k(x_ref, w_ref, b_ref, o_ref):
    # Grid = (ni, nj, nk), reduction axis last.  The f32 output block keeps the
    # same (i, j) index for every k, so it is VMEM-resident across K: we
    # accumulate directly into it (no scratch) and finalize in place.
    k = pl.program_id(2)

    @pl.when(k == 0)
    def _init():
        o_ref[...] = jnp.zeros_like(o_ref)

    o_ref[...] += jnp.dot(x_ref[...], w_ref[...],
                          preferred_element_type=jnp.float32)

    @pl.when(k == pl.num_programs(2) - 1)
    def _finalize():
        o_ref[...] = jax.nn.sigmoid(o_ref[...] + b_ref[...])


# ----------------------------------------------------------------------------
# One-time parameter preparation (model-load time, NOT per forward call)
# ----------------------------------------------------------------------------
def prepare_perceptron_params(weight, bias, *, operand_dtype=jnp.bfloat16,
                              tn_base=512, tk_base=1024):
    """W (Out, In) -> padded (In_pad, Out_pad) operand_dtype slab,
       b (Out,)    -> padded f32 (1, Out_pad).  Returns (w_p, b_p, dims)."""
    Out, In = weight.shape
    assert bias.shape == (Out,)

    tk = _pick_tile(In, tk_base, 128)
    tn = _pick_tile(Out, tn_base, 128)
    K_pad = _round_up(In, tk)
    N_pad = _round_up(Out, tn)

    w_t = weight.T.astype(operand_dtype)                       # (In, Out)
    if (K_pad, N_pad) != (In, Out):
        w_t = jnp.pad(w_t, ((0, K_pad - In), (0, N_pad - Out)))

    b_p = bias.astype(jnp.float32)
    if N_pad != Out:
        b_p = jnp.pad(b_p, (0, N_pad - Out))
    b_p = b_p.reshape(1, N_pad)

    return w_t, b_p, (In, Out, tk, tn)


# ----------------------------------------------------------------------------
# Forward
# ----------------------------------------------------------------------------
def single_perceptron_forward(x, w_prepared, b_prepared, dims, *, tm_base=256):
    """y = sigmoid(x @ W^T + b) using the pre-prepared (In_pad, Out_pad) W."""
    In, Out, tk, tn = dims
    B, In2 = x.shape
    assert In2 == In
    K_pad, N_pad = w_prepared.shape
    operand_dtype = w_prepared.dtype

    # Batch-tile sublane alignment follows operand packing (bf16 -> 16, f32 -> 8).
    sub_align = 8 * max(1, 4 // jnp.dtype(operand_dtype).itemsize)
    tm = _pick_tile(B, tm_base, sub_align)
    B_pad = _round_up(B, tm)

    x_p = x.astype(operand_dtype)
    if (B_pad, K_pad) != (B, In):
        x_p = jnp.pad(x_p, ((0, B_pad - B), (0, K_pad - In)))

    ni, nj, nk = B_pad // tm, N_pad // tn, K_pad // tk

    cost = pl.CostEstimate(
        flops=2 * B_pad * K_pad * N_pad,
        transcendentals=B_pad * N_pad,
        bytes_accessed=(x_p.size * x_p.dtype.itemsize
                        + w_prepared.size * w_prepared.dtype.itemsize
                        + b_prepared.size * b_prepared.dtype.itemsize
                        + B_pad * N_pad * 4),
    )

    if nk == 1:
        # Common perceptron case: single K tile -> no reduction axis.
        out_p = pl.pallas_call(
            _perceptron_kernel_single_k,
            out_shape=jax.ShapeDtypeStruct((B_pad, N_pad), jnp.float32),
            grid=(nj, ni),                                     # j outer, i inner
            in_specs=[
                pl.BlockSpec((tm, tk), lambda j, i: (i, 0)),   # x streams
                pl.BlockSpec((tk, tn), lambda j, i: (0, j)),   # W resident over i
                pl.BlockSpec((1, tn), lambda j, i: (0, j)),    # bias
            ],
            out_specs=pl.BlockSpec((tm, tn), lambda j, i: (i, j)),
            compiler_params=pltpu.CompilerParams(
                dimension_semantics=("parallel", "parallel")),
            cost_estimate=cost,
        )(x_p, w_prepared, b_prepared)
    else:
        out_p = pl.pallas_call(
            _perceptron_kernel_tiled_k,
            out_shape=jax.ShapeDtypeStruct((B_pad, N_pad), jnp.float32),
            grid=(ni, nj, nk),
            in_specs=[
                pl.BlockSpec((tm, tk), lambda i, j, k: (i, k)),
                pl.BlockSpec((tk, tn), lambda i, j, k: (k, j)),
                pl.BlockSpec((1, tn), lambda i, j, k: (0, j)),
            ],
            out_specs=pl.BlockSpec((tm, tn), lambda i, j, k: (i, j)),
            compiler_params=pltpu.CompilerParams(
                dimension_semantics=("parallel", "parallel", "arbitrary")),
            cost_estimate=cost,
        )(x_p, w_prepared, b_prepared)

    return out_p[:B, :Out]


if __name__ == "__main__":
    # Small shapes consistent with the module: batch=8, input=32, output=16.
    batch, input_size, output_size = 8, 32, 16

    key = jax.random.PRNGKey(0)
    kx, kw, kb = jax.random.split(key, 3)

    # nn.Linear-style init (uniform +-1/sqrt(in)).
    bound = 1.0 / jnp.sqrt(jnp.float32(input_size))
    weight = jax.random.uniform(kw, (output_size, input_size), jnp.float32,
                                minval=-bound, maxval=bound)
    bias = jax.random.uniform(kb, (output_size,), jnp.float32,
                              minval=-bound, maxval=bound)
    x = jax.random.normal(kx, (batch, input_size), jnp.float32)

    # One-time parameter prep (transpose + pad + bf16 cast), then the forward.
    w_prep, b_prep, dims = prepare_perceptron_params(weight, bias)
    y = single_perceptron_forward(x, w_prep, b_prep, dims)
    y = jax.block_until_ready(y)

    # References: same-precision bf16 reference (tight) + full f32 (loose).
    y_ref_bf16 = jax.nn.sigmoid(
        jnp.dot(x.astype(jnp.bfloat16), weight.astype(jnp.bfloat16).T,
                preferred_element_type=jnp.float32) + bias)
    y_ref_f32 = jax.nn.sigmoid(x @ weight.T + bias)

    assert y.shape == (batch, output_size)
    assert jnp.allclose(y, y_ref_bf16, atol=2e-3, rtol=2e-3), \
        "mismatch vs bf16 reference"
    assert jnp.allclose(y, y_ref_f32, atol=3e-2, rtol=3e-2), \
        "mismatch vs f32 reference"

    print("KERNEL_OK")
</pallas_src>

<mosaic_0001>
module attributes {stable_mosaic.version = 11 : i64} {
  func.func @_perceptron_kernel_single_k(%arg0: i32, %arg1: i32, %arg2: memref<16x128xbf16, #tpu.memory_space<vmem>>, %arg3: memref<128x128xbf16, #tpu.memory_space<vmem>>, %arg4: memref<1x128xf32, #tpu.memory_space<vmem>>, %arg5: memref<16x128xf32, #tpu.memory_space<vmem>>) attributes {dimension_semantics = [#tpu.dimension_semantics<parallel>, #tpu.dimension_semantics<parallel>], iteration_bounds = array<i64: 1, 1>, scalar_prefetch = 0 : i64, scratch_operands = 0 : i64, tpu.core_type = #tpu.core_type<tc>, window_params = [{transform_indices = @transform_0, window_bounds = array<i64: 16, 128>}, {transform_indices = @transform_1, window_bounds = array<i64: 128, 128>}, {transform_indices = @transform_2, window_bounds = array<i64: 1, 128>}, {transform_indices = @transform_3, window_bounds = array<i64: 16, 128>}]} {
    %c0 = arith.constant 0 : index
    %c0_0 = arith.constant 0 : index
    %0 = vector.load %arg2[%c0, %c0_0] : memref<16x128xbf16, #tpu.memory_space<vmem>>, vector<16x128xbf16>
    %c0_1 = arith.constant 0 : index
    %c0_2 = arith.constant 0 : index
    %1 = vector.load %arg3[%c0_1, %c0_2] : memref<128x128xbf16, #tpu.memory_space<vmem>>, vector<128x128xbf16>
    %cst = arith.constant dense<0.000000e+00> : vector<16x128xf32>
    %2 = tpu.matmul %0, %1, %cst {dimension_numbers = #tpu.dot_dimension_numbers<[1], [0], [0], [1], [0, 0, 1, 1], [], []>} : vector<16x128xbf16>, vector<128x128xbf16>, vector<16x128xf32> -> vector<16x128xf32>
    %c0_3 = arith.constant 0 : index
    %c0_4 = arith.constant 0 : index
    %3 = vector.load %arg4[%c0_3, %c0_4] : memref<1x128xf32, #tpu.memory_space<vmem>>, vector<1x128xf32>
    %4 = vector.broadcast %3 : vector<1x128xf32> to vector<16x128xf32>
    %5 = arith.addf %2, %4 : vector<16x128xf32>
    %6 = arith.negf %5 : vector<16x128xf32>
    %7 = math.exp %6 : vector<16x128xf32>
    %cst_5 = arith.constant 1.000000e+00 : f32
    %8 = vector.broadcast %cst_5 : f32 to vector<16x128xf32>
    %9 = arith.addf %8, %7 : vector<16x128xf32>
    %10 = arith.divf %8, %9 : vector<16x128xf32>
    %c0_6 = arith.constant 0 : index
    %c0_7 = arith.constant 0 : index
    %11 = vector.load %arg5[%c0_6, %c0_7] : memref<16x128xf32, #tpu.memory_space<vmem>>, vector<16x128xf32>
    tpu.vector_store %arg5[%c0_6, %c0_7], %10 {strides = array<i32>} : memref<16x128xf32, #tpu.memory_space<vmem>>, vector<16x128xf32>,
    return
  }
  func.func @transform_0(%arg0: i32, %arg1: i32) -> (i32, i32) {
    %c0_i32 = arith.constant 0 : i32
    %c0_i32_0 = arith.constant 0 : i32
    return %arg1, %c0_i32 : i32, i32
  }
  func.func @transform_1(%arg0: i32, %arg1: i32) -> (i32, i32) {
    %c0_i32 = arith.constant 0 : i32
    %c0_i32_0 = arith.constant 0 : i32
    return %c0_i32, %arg0 : i32, i32
  }
  func.func @transform_2(%arg0: i32, %arg1: i32) -> (i32, i32) {
    %c0_i32 = arith.constant 0 : i32
    %c0_i32_0 = arith.constant 0 : i32
    return %c0_i32, %arg0 : i32, i32
  }
  func.func @transform_3(%arg0: i32, %arg1: i32) -> (i32, i32) {
    %c0_i32 = arith.constant 0 : i32
    return %arg1, %arg0 : i32, i32
  }
}

</mosaic_0001>

<bundles_post_ra>
// kernel: tpu_custom_call.1
= control target key start
LH: loop header
LB: loop body
LE: loop exit
PB: predicated region body
PF: predicated region fallthrough
CT: control target
= control target key end

     0   :  { %8 = vsyncpa [#allocation3], 0  ;;  %s403_s0 = inlined_call_operand.hbm [shape: bf16[16,128], index: 0, kind: input, shape index: {}]   ;;  %s404_s1 = inlined_call_operand.hbm [shape: bf16[128,128], index: 1, kind: input, shape index: {}]   ;;  %s405_s2 = inlined_call_operand.vmem [shape: f32[1,128], index: 2, kind: input, shape index: {}]   ;;  %s406_s3 = inlined_call_operand.hbm [shape: f32[16,128], index: 3, kind: output, shape index: {}]  }
   0x1   :  { %9 = vsyncpa [#allocation6], 0 }
   0x2   :  { %10 = vsyncpa [#allocation4], 0  ;;  %s335_s12 = smov [#allocation2]   ;;  %s263_s16 = scalar_lea.hbm %s403_s0, 128 }
   0x3   :  { %s16_s13 = sshll.u32 %s335_s12, 4  ;;  %p264_p0 = scmp.ne.s32.totalorder %s403_s0, %s263_s16  ;;  %s17_s13 = int_to_ptr.vmem [resolvable:$true] %s16_s13 }
   0x4   :  { %p267_p1 = scmp.lt.u32.totalorder %s263_s16, %s403_s0 }
   0x6   :  { %p269_p2 = pnand %p267_p1, %p264_p0 }
   0x8   :  { %272 = shalt.err (!%p269_p2)
}
   0x9   :  { %s273_s21 = scalar_lea.vmem %s17_s13, 128  ;;  %p278_p4 = scmp.lt.s32.totalorder %s17_s13, %s17_s13 }
   0xa   :  { %p274_p3 = scmp.ne.s32.totalorder %s17_s13, %s273_s21  ;;  %p279_p5 = scmp.lt.s32.totalorder %s273_s21, %s273_s21 }
   0xc   :  { %p280_p6 = por %p279_p5, %p278_p4 }
   0xe   :  { %p281_p7 = pnand %p280_p6, %p274_p3 }
  0x10   :  { %284 = shalt.err (!%p281_p7)
}
  0x11   :  { %s336_s22 = smov 64   ;;  %s337_s23 = smov 4  }
  0x12   :  { %22 = dma.hbm_to_vmem [thread:$0]  %s403_s0, 128, %s17_s13, [#allocation3], %s336_s22, %s336_s22, %s337_s23  }
  0x13   :  { %s338_s26 = smov [#allocation5]   ;;  %s285_s30 = scalar_lea.hbm %s404_s1, 1024 }
  0x14   :  { %s28_s27 = sshll.u32 %s338_s26, 4  ;;  %p286_p8 = scmp.ne.s32.totalorder %s404_s1, %s285_s30  ;;  %s29_s27 = int_to_ptr.vmem [resolvable:$true] %s28_s27 }
  0x15   :  { %p289_p9 = scmp.lt.u32.totalorder %s285_s30, %s404_s1 }
  0x17   :  { %p291_p10 = pnand %p289_p9, %p286_p8 }
  0x19   :  { %294 = shalt.err (!%p291_p10)
}
  0x1a   :  { %s295_s8 = scalar_lea.vmem %s29_s27, 1024  ;;  %p300_p12 = scmp.lt.s32.totalorder %s29_s27, %s29_s27 }
  0x1b   :  { %p296_p11 = scmp.ne.s32.totalorder %s29_s27, %s295_s8  ;;  %p301_p13 = scmp.lt.s32.totalorder %s295_s8, %s295_s8 }
  0x1d   :  { %p302_p0 = por %p301_p13, %p300_p12 }
  0x1f   :  { %p303_p1 = pnand %p302_p0, %p296_p11 }
  0x21   :  { %306 = shalt.err (!%p303_p1)
}
  0x22   :  { %34 = dma.hbm_to_vmem [thread:$0]  %s404_s1, 1024, %s29_s27, [#allocation6], %s336_s22, %s336_s22, %s337_s23  }
  0x23   :  { %329 = dma.done.wait [#allocation3], 128  }
  0x24   :  { %330 = vsyncadd [#allocation3], 4294967168 }
  0x25   :  { %331 = dma.done.wait [#allocation6], 1024  }
  0x26   :  { %332 = vsyncadd [#allocation6], 4294966272  ;;  %v339_v0 = vmov 0.0   ;;  %vm340_vm0 = vmmov 0   ;;  %v246_v1 = vld [vmem:[#allocation5] sm:$0xff]   ;;  %v247_v2 = vld [vmem:[#allocation5 + $0x8] sm:$0xff]  }
  0x27   :  { %217 = vmatprep.subr.bf16.mxu0 %v339_v0  ;;  %233 = vmatprep.mubr.msk.bf16.mxu0 %vm340_vm0, %v339_v0  ;;  %v248_v3 = vld [vmem:[#allocation5 + $0x10] sm:$0xff]   ;;  %v249_v4 = vld [vmem:[#allocation5 + $0x18] sm:$0xff]   ;;  %v250_v5 = vld [vmem:[#allocation5 + $0x20] sm:$0xff]   ;;  %s341_s11 = smov [#allocation7]  }
  0x28   :  { %218 = vmatpush3.bf16.msra.mxu0 %v246_v1  ;;  %v251_v6 = vld [vmem:[#allocation5 + $0x28] sm:$0xff]   ;;  %v252_v7 = vld [vmem:[#allocation5 + $0x30] sm:$0xff]   ;;  %v253_v8 = vld [vmem:[#allocation5 + $0x38] sm:$0xff]   ;;  %s183_s12 = sshll.u32 %s341_s11, 4  ;;  %s184_s12 = int_to_ptr.vmem [resolvable:$true] %s183_s12 }
  0x29   :  { %219 = vmatprep.subr.bf16.mxu0 %v339_v0  ;;  %v254_v9 = vld [vmem:[#allocation2] sm:$0xff]   ;;  %p312_p3 = scmp.lt.s32.totalorder %s184_s12, %s184_s12 }
  0x2a   :  { %v196_v10 = vld [vmem:[%s405_s2] ss:$0 sm:$0xff]  ;;  %s307_s2 = scalar_lea.vmem %s184_s12, 256 }
  0x2b   :  { %p308_p2 = scmp.ne.s32.totalorder %s184_s12, %s307_s2  ;;  %p313_p4 = scmp.lt.s32.totalorder %s307_s2, %s307_s2 }
  0x2c   :  { %220 = vmatpush3.bf16.msra.mxu0 %v247_v2 }
  0x2d   :  { %221 = vmatprep.subr.bf16.mxu0 %v339_v0  ;;  %p314_p5 = por %p313_p4, %p312_p3 }
  0x2f   :  { %p315_p6 = pnand %p314_p5, %p308_p2 }
  0x30   :  { %222 = vmatpush3.bf16.msra.mxu0 %v248_v3 }
  0x31   :  { %223 = vmatprep.subr.bf16.mxu0 %v339_v0 }
  0x34   :  { %224 = vmatpush3.bf16.msra.mxu0 %v249_v4 }
  0x35   :  { %225 = vmatprep.subr.bf16.mxu0 %v339_v0 }
  0x38   :  { %226 = vmatpush3.bf16.msra.mxu0 %v250_v5 }
  0x39   :  { %227 = vmatprep.subr.bf16.mxu0 %v339_v0 }
  0x3c   :  { %228 = vmatpush3.bf16.msra.mxu0 %v251_v6 }
  0x3d   :  { %229 = vmatprep.subr.bf16.mxu0 %v339_v0 }
  0x40   :  { %230 = vmatpush3.bf16.msra.mxu0 %v252_v7 }
  0x41   :  { %231 = vmatprep.subr.bf16.mxu0 %v339_v0 }
  0x44   :  { %232 = vmatpush3.bf16.msra.mxu0 %v253_v8 }
  0x47   :  { %234 = vmatmul.mubr.bf16.vlgmr.msra.gmra.mrb[0].mxu0 %v254_v9 }
 0x11a   :  { %v157_v11 = vpop.f32.mrb[0].mxu0 }
 0x11b   :  { %v158_v12 = vadd.f32 %v196_v10, %v157_v11  ;;  %v235_v13 = vpop.f32.mrb[1].mxu0 }
 0x11c   :  { %v160_v14 = vpop.f32.mrb[2].mxu0 }
 0x11d   :  { %v206_v15 = vmul.f32 -1.442695, %v158_v12  ;;  %v161_v16 = vadd.f32 %v196_v10, %v160_v14  ;;  %v236_v17 = vpop.f32.mrb[3].mxu0 }
 0x11f   :  { %255 = vpow2.f32 %v206_v15  ;;  %v207_v18 = vmul.f32 -1.442695, %v161_v16 }
 0x121   :  { %257 = vpow2.f32 %v207_v18 }
 0x129   :  { %v256_v19 = vpop.eup %255 }
 0x12a   :  { %v170_v20 = vadd.f32 1.0, %v256_v19 }
 0x12b   :  { %v258_v21 = vpop.eup %257 }
 0x12c   :  { %259 = vrcp.f32 %v170_v20  ;;  %v171_v22 = vadd.f32 1.0, %v258_v21 }
 0x12e   :  { %261 = vrcp.f32 %v171_v22 }
 0x136   :  { %v260_v23 = vpop.eup %259 }
 0x137   :  { %176 = vst [vmem:[#allocation7] sm:$0xff] %v260_v23 }
 0x138   :  { %v262_v24 = vpop.eup %261 }
 0x139   :  { %177 = vst [vmem:[#allocation7 + $0x8] sm:$0xff] %v262_v24 }
 0x13a   :  { %318 = shalt.err (!%p315_p6)
}
 0x13b   :  { %s319_s15 = scalar_lea.hbm %s406_s3, 256 }
 0x13c   :  { %p320_p7 = scmp.ne.s32.totalorder %s406_s3, %s319_s15  ;;  %p323_p8 = scmp.lt.u32.totalorder %s319_s15, %s406_s3 }
 0x13e   :  { %p325_p9 = pnand %p323_p8, %p320_p7 }
 0x140   :  { %328 = shalt.err (!%p325_p9)
}
 0x141   :  { %s342_s20 = smov 128   ;;  %s343_s21 = smov 8  }
 0x142   :  { %189 = dma.vmem_to_hbm [thread:$0]  %s184_s12, 256, %s406_s3, [#allocation4], %s342_s20, %s342_s20, %s343_s21  }
 0x143   :  { %333 = dma.done.wait [#allocation4], 256  }
 0x144   :  { %334 = vsyncadd [#allocation4], 4294967040 }
 0x145   :  { %193 = vsyncpa [#allocation3], 1 }
 0x146   :  { %194 = vsyncpa [#allocation6], 1 }
 0x147   :  { %195 = vsyncpa [#allocation4], 1 }

</bundles_post_ra>
